<compile_context>
chip_gen: v5e
topology: v5e:2x2
jax: 0.10.0
libtpu: 0.0.40
codegen_flags: <defaults>
</compile_context>

<pallas_src>
import jax
import jax.numpy as jnp
from jax.experimental import pallas as pl
from jax.experimental.pallas import tpu as pltpu

WIDTH = 128        # net_width
DEFAULT_TB = 4096  # batch scalars (lanes) per grid step


# -----------------------------------------------------------------------------
# Kernel body: full MLP forward for one (channel, batch-tile) grid point.
# Hidden state H has shape (W, TB): W on sublanes, batch on lanes.
# -----------------------------------------------------------------------------
def _mlp_body(x_ref, w0_ref, b0_ref, wh_ref, bh_ref, wl_ref, bl_ref, o_ref,
              hidden):
    x = x_ref[...]                                           # (1, TB)  f32
    # Layer 0: Linear(1, W) is rank-1 -> broadcast FMA on the VPU (no MXU).
    h = jnp.maximum(x * w0_ref[...] + b0_ref[...], 0.0)      # (W, TB)  f32
    # Hidden layers: the only MXU work.  bf16 operands, f32 accumulation.
    for i in range(hidden):
        h = jnp.dot(wh_ref[i], h.astype(jnp.bfloat16),
                    preferred_element_type=jnp.float32)       # (W, TB)
        h = jnp.maximum(h + bh_ref[i], 0.0)
    # Output: Linear(W, 1) -> VPU multiply + sublane reduce -> lane-dense row.
    out = jnp.sum(h * wl_ref[...], axis=0, keepdims=True) + bl_ref[...]
    o_ref[...] = jax.nn.sigmoid(out)                          # (1, TB)


def _make_kernel(hidden):
    if hidden > 0:
        def kernel(x_ref, w0_ref, b0_ref, wh_ref, bh_ref, wl_ref, bl_ref,
                   o_ref):
            _mlp_body(x_ref, w0_ref, b0_ref, wh_ref, bh_ref, wl_ref, bl_ref,
                      o_ref, hidden)
    else:
        # Specialized: no dummy Wh/bh DMA when there are no hidden layers.
        def kernel(x_ref, w0_ref, b0_ref, wl_ref, bl_ref, o_ref):
            _mlp_body(x_ref, w0_ref, b0_ref, None, None, wl_ref, bl_ref,
                      o_ref, 0)
    return kernel


def _round_up(n, m):
    return ((n + m - 1) // m) * m


# -----------------------------------------------------------------------------
# Wrapper: one pallas_call over a (channel, batch-tile) grid.
# x: (C, N) f32, batch lane-dense.  Params are in "math" layout (see
# init_params); the tiny weight transposes/casts below happen once at trace
# time in XLA, not per grid step.
# -----------------------------------------------------------------------------
def _tone_map_stacked(x, params, *, hidden, tb=DEFAULT_TB):
    w0, b0, wh, bh, wl, bl = params
    c, n = x.shape
    tb = min(tb, _round_up(n, 128))          # don't over-pad tiny batches
    pad = (-n) % tb
    if pad:
        x = jnp.pad(x, ((0, 0), (0, pad)))
    n_padded = x.shape[1]
    x = x[:, None, :]                                         # (C, 1, N_pad)

    # Kernel-layout weights: W on sublanes.
    w0_c = jnp.transpose(w0, (0, 2, 1))                       # (C, W, 1)
    b0_c = jnp.transpose(b0, (0, 2, 1))                       # (C, W, 1)
    wl_c = jnp.transpose(wl, (0, 2, 1))                       # (C, W, 1)

    in_specs = [
        pl.BlockSpec((None, 1, tb), lambda ci, bi: (ci, 0, bi)),      # x
        pl.BlockSpec((None, WIDTH, 1), lambda ci, bi: (ci, 0, 0)),    # w0
        pl.BlockSpec((None, WIDTH, 1), lambda ci, bi: (ci, 0, 0)),    # b0
    ]
    operands = [x, w0_c, b0_c]
    if hidden > 0:
        # Transpose so h_next = Wh^T @ h; bf16 halves weight DMA + peak MXU.
        wh_t = jnp.transpose(wh, (0, 1, 3, 2)).astype(jnp.bfloat16)   # (C,H,W,W)
        bh_c = jnp.transpose(bh, (0, 1, 3, 2))                        # (C,H,W,1)
        in_specs += [
            pl.BlockSpec((None, hidden, WIDTH, WIDTH),
                         lambda ci, bi: (ci, 0, 0, 0)),               # Wh^T
            pl.BlockSpec((None, hidden, WIDTH, 1),
                         lambda ci, bi: (ci, 0, 0, 0)),               # bh
        ]
        operands += [wh_t, bh_c]
    in_specs += [
        pl.BlockSpec((None, WIDTH, 1), lambda ci, bi: (ci, 0, 0)),    # wl
        pl.BlockSpec((None, 1, 1), lambda ci, bi: (ci, 0, 0)),        # bl
    ]
    operands += [wl_c, bl]

    out = pl.pallas_call(
        _make_kernel(hidden),
        out_shape=jax.ShapeDtypeStruct((c, 1, n_padded), jnp.float32),
        grid_spec=pltpu.PrefetchScalarGridSpec(
            num_scalar_prefetch=0,
            grid=(c, n_padded // tb),        # channel outer: weights resident
            in_specs=in_specs,
            out_specs=pl.BlockSpec((None, 1, tb), lambda ci, bi: (ci, 0, bi)),
        ),
        compiler_params=pltpu.CompilerParams(
            dimension_semantics=("parallel", "parallel")),
    )(*operands)
    return out[:, 0, :n]                                      # (C, N)


def tone_map_gray(x, params, *, hidden, tb=DEFAULT_TB):
    """input_type='Gray': x (N, 1) -> (N, 1)."""
    out = _tone_map_stacked(x[:, 0][None], params, hidden=hidden, tb=tb)
    return out[0][:, None]


def tone_map_rgb(x, params, *, hidden, tb=DEFAULT_TB):
    """input_type='RGB': x (N, 3, 1) -> (N, 3).  Three per-channel MLPs fused
    into a single pallas_call via the channel grid axis."""
    xs = jnp.transpose(x[:, :, 0], (1, 0))                    # (3, N)
    out = _tone_map_stacked(xs, params, hidden=hidden, tb=tb)  # (3, N)
    return jnp.transpose(out, (1, 0))                         # (N, 3)


# -----------------------------------------------------------------------------
# Deterministic parameter construction (mirrors weights_biases_init:
# xavier_uniform_ weights, zero biases).  Weights stored (in, out); the last
# layer is stored as (1, W) so the output reduce is a plain weighted sum.
# -----------------------------------------------------------------------------
def _xavier(key, fan_in, fan_out):
    bound = (6.0 / (fan_in + fan_out)) ** 0.5
    return jax.random.uniform(key, (fan_in, fan_out), jnp.float32, -bound, bound)


def init_params(key, hidden, channels, width=WIDTH):
    w0s, whs, wls = [], [], []
    for ck in jax.random.split(key, channels):
        k0, kh, kl = jax.random.split(ck, 3)
        w0s.append(_xavier(k0, 1, width))                     # Linear(1, W)
        if hidden > 0:
            hk = jax.random.split(kh, hidden)
            whs.append(jnp.stack([_xavier(hk[i], width, width)
                                  for i in range(hidden)]))
        wls.append(jnp.transpose(_xavier(kl, width, 1)))      # (1, W)
    w0 = jnp.stack(w0s)                                       # (C, 1, W)
    b0 = jnp.zeros((channels, 1, width), jnp.float32)
    if hidden > 0:
        wh = jnp.stack(whs)                                   # (C, H, W, W)
        bh = jnp.zeros((channels, hidden, 1, width), jnp.float32)
    else:
        wh, bh = None, None
    wl = jnp.stack(wls)                                       # (C, 1, W)
    bl = jnp.zeros((channels, 1, 1), jnp.float32)
    return (w0, b0, wh, bh, wl, bl)


# Pure-JAX f32 reference (matches the PyTorch forward), x: (C, N, 1).
def ref_forward(x, params, hidden):
    w0, b0, wh, bh, wl, bl = params
    outs = []
    for ci in range(x.shape[0]):
        h = jnp.maximum(x[ci] @ w0[ci] + b0[ci], 0.0)
        for i in range(hidden):
            h = jnp.maximum(h @ wh[ci, i] + bh[ci, i], 0.0)
        o = jnp.sum(h * wl[ci], axis=-1, keepdims=True) + bl[ci]
        outs.append(jax.nn.sigmoid(o))
    return jnp.stack(outs)


if __name__ == "__main__":
    key = jax.random.PRNGKey(0)
    k_in, k_gray, k_rgb, k_gray0 = jax.random.split(key, 4)
    n = 200       # exercises batch padding
    hidden = 2    # net_hidden

    # --- Gray path, hidden=2 ---
    x_gray = jax.random.normal(k_in, (n, 1), jnp.float32)
    p_gray = init_params(k_gray, hidden, channels=1)
    out_gray = jax.block_until_ready(tone_map_gray(x_gray, p_gray, hidden=hidden))
    assert out_gray.shape == (n, 1)
    ref_gray = ref_forward(x_gray[None], p_gray, hidden)[0]
    assert jnp.allclose(out_gray, ref_gray, atol=2e-2)

    # --- RGB path, hidden=2 (3 per-channel MLPs, one fused kernel) ---
    x_rgb = jax.random.normal(k_in, (n, 3, 1), jnp.float32)
    p_rgb = init_params(k_rgb, hidden, channels=3)
    out_rgb = jax.block_until_ready(tone_map_rgb(x_rgb, p_rgb, hidden=hidden))
    assert out_rgb.shape == (n, 3)
    ref_rgb = ref_forward(jnp.transpose(x_rgb, (1, 0, 2)), p_rgb, hidden)
    ref_rgb = jnp.transpose(ref_rgb[:, :, 0], (1, 0))
    assert jnp.allclose(out_rgb, ref_rgb, atol=2e-2)

    # --- Gray path, hidden=0 (module default; specialized no-hidden kernel) ---
    p_gray0 = init_params(k_gray0, 0, channels=1)
    out_gray0 = jax.block_until_ready(tone_map_gray(x_gray, p_gray0, hidden=0))
    assert out_gray0.shape == (n, 1)
    ref_gray0 = ref_forward(x_gray[None], p_gray0, 0)[0]
    assert jnp.allclose(out_gray0, ref_gray0, atol=2e-2)

    assert bool(jnp.all((out_gray >= 0.0) & (out_gray <= 1.0)))
    assert bool(jnp.all((out_rgb >= 0.0) & (out_rgb <= 1.0)))

    print("KERNEL_OK")
</pallas_src>

<mosaic_0001>
module attributes {stable_mosaic.version = 11 : i64} {
  func.func @kernel(%arg0: i32, %arg1: i32, %arg2: memref<1x1x256xf32, #tpu.memory_space<vmem>>, %arg3: memref<1x128x1xf32, #tpu.memory_space<vmem>>, %arg4: memref<1x128x1xf32, #tpu.memory_space<vmem>>, %arg5: memref<1x2x128x128xbf16, #tpu.memory_space<vmem>>, %arg6: memref<1x2x128x1xf32, #tpu.memory_space<vmem>>, %arg7: memref<1x128x1xf32, #tpu.memory_space<vmem>>, %arg8: memref<1x1x1xf32, #tpu.memory_space<vmem>>, %arg9: memref<1x1x256xf32, #tpu.memory_space<vmem>>) attributes {dimension_semantics = [#tpu.dimension_semantics<parallel>, #tpu.dimension_semantics<parallel>], iteration_bounds = array<i64: 1, 1>, scalar_prefetch = 0 : i64, scratch_operands = 0 : i64, tpu.core_type = #tpu.core_type<tc>, window_params = [{transform_indices = @transform_0, window_bounds = array<i64: 1, 1, 256>}, {transform_indices = @transform_1, window_bounds = array<i64: 1, 128, 1>}, {transform_indices = @transform_2, window_bounds = array<i64: 1, 128, 1>}, {transform_indices = @transform_3, window_bounds = array<i64: 1, 2, 128, 128>}, {transform_indices = @transform_4, window_bounds = array<i64: 1, 2, 128, 1>}, {transform_indices = @transform_5, window_bounds = array<i64: 1, 128, 1>}, {transform_indices = @transform_6, window_bounds = array<i64: 1, 1, 1>}, {transform_indices = @transform_7, window_bounds = array<i64: 1, 1, 256>}]} {
    %c0 = arith.constant 0 : index
    %c0_0 = arith.constant 0 : index
    %c0_1 = arith.constant 0 : index
    %0 = vector.load %arg2[%c0, %c0_0, %c0_1] : memref<1x1x256xf32, #tpu.memory_space<vmem>>, vector<1x1x256xf32>
    %1 = vector.shape_cast %0 : vector<1x1x256xf32> to vector<1x256xf32>
    %c0_2 = arith.constant 0 : index
    %c0_3 = arith.constant 0 : index
    %c0_4 = arith.constant 0 : index
    %2 = vector.load %arg3[%c0_2, %c0_3, %c0_4] : memref<1x128x1xf32, #tpu.memory_space<vmem>>, vector<1x128x1xf32>
    %3 = vector.shape_cast %2 : vector<1x128x1xf32> to vector<128x1xf32>
    %4 = vector.broadcast %1 : vector<1x256xf32> to vector<128x256xf32>
    %5 = vector.broadcast %3 : vector<128x1xf32> to vector<128x256xf32>
    %6 = arith.mulf %4, %5 : vector<128x256xf32>
    %c0_5 = arith.constant 0 : index
    %c0_6 = arith.constant 0 : index
    %c0_7 = arith.constant 0 : index
    %7 = vector.load %arg4[%c0_5, %c0_6, %c0_7] : memref<1x128x1xf32, #tpu.memory_space<vmem>>, vector<1x128x1xf32>
    %8 = vector.shape_cast %7 : vector<1x128x1xf32> to vector<128x1xf32>
    %9 = vector.broadcast %8 : vector<128x1xf32> to vector<128x256xf32>
    %10 = arith.addf %6, %9 : vector<128x256xf32>
    %cst = arith.constant 0.000000e+00 : f32
    %11 = vector.broadcast %cst : f32 to vector<128x256xf32>
    %12 = arith.maximumf %10, %11 : vector<128x256xf32>
    %c0_8 = arith.constant 0 : index
    %c0_9 = arith.constant 0 : index
    %c0_10 = arith.constant 0 : index
    %c0_11 = arith.constant 0 : index
    %13 = vector.load %arg5[%c0_8, %c0_9, %c0_10, %c0_11] : memref<1x2x128x128xbf16, #tpu.memory_space<vmem>>, vector<1x1x128x128xbf16>
    %14 = vector.shape_cast %13 : vector<1x1x128x128xbf16> to vector<128x128xbf16>
    %15 = arith.truncf %12 : vector<128x256xf32> to vector<128x256xbf16>
    %cst_12 = arith.constant dense<0.000000e+00> : vector<128x256xf32>
    %16 = tpu.matmul %14, %15, %cst_12 {dimension_numbers = #tpu.dot_dimension_numbers<[1], [0], [0], [1], [0, 0, 1, 1], [], []>} : vector<128x128xbf16>, vector<128x256xbf16>, vector<128x256xf32> -> vector<128x256xf32>
    %c0_13 = arith.constant 0 : index
    %c0_14 = arith.constant 0 : index
    %c0_15 = arith.constant 0 : index
    %c0_16 = arith.constant 0 : index
    %17 = vector.load %arg6[%c0_13, %c0_14, %c0_15, %c0_16] : memref<1x2x128x1xf32, #tpu.memory_space<vmem>>, vector<1x1x128x1xf32>
    %18 = vector.shape_cast %17 : vector<1x1x128x1xf32> to vector<128x1xf32>
    %19 = vector.broadcast %18 : vector<128x1xf32> to vector<128x256xf32>
    %20 = arith.addf %16, %19 : vector<128x256xf32>
    %cst_17 = arith.constant 0.000000e+00 : f32
    %21 = vector.broadcast %cst_17 : f32 to vector<128x256xf32>
    %22 = arith.maximumf %20, %21 : vector<128x256xf32>
    %c0_18 = arith.constant 0 : index
    %c1 = arith.constant 1 : index
    %c0_19 = arith.constant 0 : index
    %c0_20 = arith.constant 0 : index
    %23 = vector.load %arg5[%c0_18, %c1, %c0_19, %c0_20] : memref<1x2x128x128xbf16, #tpu.memory_space<vmem>>, vector<1x1x128x128xbf16>
    %24 = vector.shape_cast %23 : vector<1x1x128x128xbf16> to vector<128x128xbf16>
    %25 = arith.truncf %22 : vector<128x256xf32> to vector<128x256xbf16>
    %cst_21 = arith.constant dense<0.000000e+00> : vector<128x256xf32>
    %26 = tpu.matmul %24, %25, %cst_21 {dimension_numbers = #tpu.dot_dimension_numbers<[1], [0], [0], [1], [0, 0, 1, 1], [], []>} : vector<128x128xbf16>, vector<128x256xbf16>, vector<128x256xf32> -> vector<128x256xf32>
    %c0_22 = arith.constant 0 : index
    %c1_23 = arith.constant 1 : index
    %c0_24 = arith.constant 0 : index
    %c0_25 = arith.constant 0 : index
    %27 = vector.load %arg6[%c0_22, %c1_23, %c0_24, %c0_25] : memref<1x2x128x1xf32, #tpu.memory_space<vmem>>, vector<1x1x128x1xf32>
    %28 = vector.shape_cast %27 : vector<1x1x128x1xf32> to vector<128x1xf32>
    %29 = vector.broadcast %28 : vector<128x1xf32> to vector<128x256xf32>
    %30 = arith.addf %26, %29 : vector<128x256xf32>
    %cst_26 = arith.constant 0.000000e+00 : f32
    %31 = vector.broadcast %cst_26 : f32 to vector<128x256xf32>
    %32 = arith.maximumf %30, %31 : vector<128x256xf32>
    %c0_27 = arith.constant 0 : index
    %c0_28 = arith.constant 0 : index
    %c0_29 = arith.constant 0 : index
    %33 = vector.load %arg7[%c0_27, %c0_28, %c0_29] : memref<1x128x1xf32, #tpu.memory_space<vmem>>, vector<1x128x1xf32>
    %34 = vector.shape_cast %33 : vector<1x128x1xf32> to vector<128x1xf32>
    %35 = vector.broadcast %34 : vector<128x1xf32> to vector<128x256xf32>
    %36 = arith.mulf %32, %35 : vector<128x256xf32>
    %cst_30 = arith.constant dense<0.000000e+00> : vector<256xf32>
    %37 = vector.multi_reduction <add>, %36, %cst_30 [0] : vector<128x256xf32> to vector<256xf32>
    %38 = vector.shape_cast %37 : vector<256xf32> to vector<1x256xf32>
    %c0_31 = arith.constant 0 : index
    %c0_32 = arith.constant 0 : index
    %c0_33 = arith.constant 0 : index
    %39 = vector.load %arg8[%c0_31, %c0_32, %c0_33] : memref<1x1x1xf32, #tpu.memory_space<vmem>>, vector<1x1x1xf32>
    %40 = vector.shape_cast %39 : vector<1x1x1xf32> to vector<1x1xf32>
    %41 = vector.broadcast %40 : vector<1x1xf32> to vector<1x256xf32>
    %42 = arith.addf %38, %41 : vector<1x256xf32>
    %43 = arith.negf %42 : vector<1x256xf32>
    %44 = math.exp %43 : vector<1x256xf32>
    %cst_34 = arith.constant 1.000000e+00 : f32
    %45 = vector.broadcast %cst_34 : f32 to vector<1x256xf32>
    %46 = arith.addf %45, %44 : vector<1x256xf32>
    %47 = arith.divf %45, %46 : vector<1x256xf32>
    %c0_35 = arith.constant 0 : index
    %c0_36 = arith.constant 0 : index
    %c0_37 = arith.constant 0 : index
    %48 = vector.load %arg9[%c0_35, %c0_36, %c0_37] : memref<1x1x256xf32, #tpu.memory_space<vmem>>, vector<1x1x256xf32>
    %49 = vector.shape_cast %48 : vector<1x1x256xf32> to vector<1x256xf32>
    %50 = vector.shape_cast %47 : vector<1x256xf32> to vector<1x1x256xf32>
    tpu.vector_store %arg9[%c0_35, %c0_36, %c0_37], %50 {strides = array<i32>} : memref<1x1x256xf32, #tpu.memory_space<vmem>>, vector<1x1x256xf32>,
    return
  }
  func.func @transform_0(%arg0: i32, %arg1: i32) -> (i32, i32, i32) {
    %c0_i32 = arith.constant 0 : i32
    %c0_i32_0 = arith.constant 0 : i32
    return %arg0, %c0_i32, %arg1 : i32, i32, i32
  }
  func.func @transform_1(%arg0: i32, %arg1: i32) -> (i32, i32, i32) {
    %c0_i32 = arith.constant 0 : i32
    %c0_i32_0 = arith.constant 0 : i32
    %c0_i32_1 = arith.constant 0 : i32
    return %arg0, %c0_i32, %c0_i32_0 : i32, i32, i32
  }
  func.func @transform_2(%arg0: i32, %arg1: i32) -> (i32, i32, i32) {
    %c0_i32 = arith.constant 0 : i32
    %c0_i32_0 = arith.constant 0 : i32
    %c0_i32_1 = arith.constant 0 : i32
    return %arg0, %c0_i32, %c0_i32_0 : i32, i32, i32
  }
  func.func @transform_3(%arg0: i32, %arg1: i32) -> (i32, i32, i32, i32) {
    %c0_i32 = arith.constant 0 : i32
    %c0_i32_0 = arith.constant 0 : i32
    %c0_i32_1 = arith.constant 0 : i32
    %c0_i32_2 = arith.constant 0 : i32
    return %arg0, %c0_i32, %c0_i32_0, %c0_i32_1 : i32, i32, i32, i32
  }
  func.func @transform_4(%arg0: i32, %arg1: i32) -> (i32, i32, i32, i32) {
    %c0_i32 = arith.constant 0 : i32
    %c0_i32_0 = arith.constant 0 : i32
    %c0_i32_1 = arith.constant 0 : i32
    %c0_i32_2 = arith.constant 0 : i32
    return %arg0, %c0_i32, %c0_i32_0, %c0_i32_1 : i32, i32, i32, i32
  }
  func.func @transform_5(%arg0: i32, %arg1: i32) -> (i32, i32, i32) {
    %c0_i32 = arith.constant 0 : i32
    %c0_i32_0 = arith.constant 0 : i32
    %c0_i32_1 = arith.constant 0 : i32
    return %arg0, %c0_i32, %c0_i32_0 : i32, i32, i32
  }
  func.func @transform_6(%arg0: i32, %arg1: i32) -> (i32, i32, i32) {
    %c0_i32 = arith.constant 0 : i32
    %c0_i32_0 = arith.constant 0 : i32
    %c0_i32_1 = arith.constant 0 : i32
    return %arg0, %c0_i32, %c0_i32_0 : i32, i32, i32
  }
  func.func @transform_7(%arg0: i32, %arg1: i32) -> (i32, i32, i32) {
    %c0_i32 = arith.constant 0 : i32
    %c0_i32_0 = arith.constant 0 : i32
    return %arg0, %c0_i32, %arg1 : i32, i32, i32
  }
}

</mosaic_0001>

<bundles_post_ra>
// kernel: tpu_custom_call.1
= control target key start
LH: loop header
LB: loop body
LE: loop exit
PB: predicated region body
PF: predicated region fallthrough
CT: control target
= control target key end

     0   :  { %s1807_s0 = inlined_call_operand.vmem [shape: f32[1,1,256], index: 0, kind: input, shape index: {}]   ;;  %s1808_s1 = inlined_call_operand.vmem [shape: f32[1,128,1], index: 1, kind: input, shape index: {}]   ;;  %s1809_s2 = inlined_call_operand.vmem [shape: f32[1,128,1], index: 2, kind: input, shape index: {}]   ;;  %s1810_s3 = inlined_call_operand.vmem [shape: bf16[1,2,128,128], index: 3, kind: input, shape index: {}]   ;;  %s1811_s4 = inlined_call_operand.vmem [shape: f32[1,2,128,1], index: 4, kind: input, shape index: {}]   ;;  %s1812_s5 = inlined_call_operand.vmem [shape: f32[1,128,1], index: 5, kind: input, shape index: {}]   ;;  %s1813_s6 = inlined_call_operand.<no memory space> [shape: f32[1,1,1], index: 6, kind: input, shape index: {}]   ;;  %s1814_s7 = inlined_call_operand.hbm [shape: f32[1,1,256], index: 7, kind: output, shape index: {}]  }
   0x1   :  { %v12_v0 = vstv %s1813_s6 }
   0x2   :  { %13 = vst [vmem:[#allocation2] sm:$0x1] %v12_v0 }
   0x3   :  { %v177_v1 = vld [vmem:[%s1809_s2 + $0x70] sm:$0xff]  ;;  %v42_v3 = vld [vmem:[%s1808_s1 + $0x60] sm:$0xff]  ;;  %v1334_v4 = vmov 0  }
   0x4   :  { %v44_v2 = vld [vmem:[%s1808_s1 + $0x70] sm:$0xff]  ;;  %1299 = vset.pattern.permute.xlu2 %v1334_v4  ;;  %1298 = vset.pattern.permute.xlu1 %v1334_v4 }
   0x5   :  { %1297 = vset.pattern.permute.xlu0 %v1334_v4  ;;  %251 = vperm.xlu1 %1298, %v177_v1  }
   0x6   :  { %123 = vperm.xlu0 %1297, %v44_v2   ;;  %113 = vperm.xlu2 %1299, %v42_v3  }
   0x7   :  { %14 = vsyncpa [#allocation4], 0  ;;  %v178_v5 = vld [vmem:[%s1809_s2 + $0x78] sm:$0xff]  ;;  %v43_v7 = vld [vmem:[%s1808_s1 + $0x68] sm:$0xff]  ;;  %s1172_s14 = sshll.u32 %s1814_s7, 4  ;;  %vm1157_vm7 = vcmask 1040384   ;;  %s1173_s14 = int_to_ptr.hbm [resolvable:$true] %s1172_s14 }
   0x8   :  { %v45_v6 = vld [vmem:[%s1808_s1 + $0x78] sm:$0xff]  ;;  %v176_v8 = vld [vmem:[%s1809_s2 + $0x68] sm:$0xff]  ;;  %v175_v9 = vld [vmem:[%s1809_s2 + $0x60] sm:$0xff] }
   0x9   :  { %v40_v10 = vld [vmem:[%s1808_s1 + $0x50] sm:$0xff]  ;;  %v41_v12 = vld [vmem:[%s1808_s1 + $0x58] sm:$0xff]  ;;  %v39_v14 = vld [vmem:[%s1808_s1 + $0x48] sm:$0xff] }
   0xa   :  { %v173_v11 = vld [vmem:[%s1809_s2 + $0x50] sm:$0xff]  ;;  %v174_v13 = vld [vmem:[%s1809_s2 + $0x58] sm:$0xff]  ;;  %v171_v15 = vld [vmem:[%s1809_s2 + $0x40] sm:$0xff] }
   0xb   :  { %v38_v16 = vld [vmem:[%s1808_s1 + $0x40] sm:$0xff]  ;;  %v36_v17 = vld [vmem:[%s1808_s1 + $0x30] sm:$0xff]  ;;  %v172_v18 = vld [vmem:[%s1809_s2 + $0x48] sm:$0xff] }
   0xc   :  { %v37_v19 = vld [vmem:[%s1808_s1 + $0x38] sm:$0xff]  ;;  %v169_v21 = vld [vmem:[%s1809_s2 + $0x30] sm:$0xff]  ;;  %v34_v22 = vld [vmem:[%s1808_s1 + $0x20] sm:$0xff] }
   0xd   :  { %256 = vperm.xlu1 %1298, %v178_v5   ;;  %v170_v20 = vld [vmem:[%s1809_s2 + $0x38] sm:$0xff]  ;;  %v167_v23 = vld [vmem:[%s1809_s2 + $0x20] sm:$0xff]  ;;  %v35_v24 = vld [vmem:[%s1808_s1 + $0x28] sm:$0xff] }
   0xe   :  { %128 = vperm.xlu0 %1297, %v45_v6   ;;  %118 = vperm.xlu2 %1299, %v43_v7   ;;  %v168_v25 = vld [vmem:[%s1809_s2 + $0x28] sm:$0xff]  ;;  %v33_v26 = vld [vmem:[%s1808_s1 + $0x18] sm:$0xff]  ;;  %v165_v27 = vld [vmem:[%s1809_s2 + $0x10] sm:$0xff] }
   0xf   :  { %v32_v28 = vld [vmem:[%s1808_s1 + $0x10] sm:$0xff]  ;;  %v30_v29 = vld [vmem:[%s1808_s1] sm:$0xff]  ;;  %v166_v30 = vld [vmem:[%s1809_s2 + $0x18] sm:$0xff] }
  0x10   :  { %v31_v31 = vld [vmem:[%s1808_s1 + $0x8] sm:$0xff]  ;;  %v163_v33 = vld [vmem:[%s1809_s2] sm:$0xff]  ;;  %v369_v34 = vld [vmem:[%s1811_s4 + $0x70] sm:$0xff] }
  0x11   :  { %v164_v32 = vld [vmem:[%s1809_s2 + $0x8] sm:$0xff]  ;;  %v367_v35 = vld [vmem:[%s1811_s4 + $0x60] sm:$0xff]  ;;  %v370_v36 = vld [vmem:[%s1811_s4 + $0x78] sm:$0xff] }
  0x12   :  { %v368_v37 = vld [vmem:[%s1811_s4 + $0x68] sm:$0xff]  ;;  %v366_v38 = vld [vmem:[%s1811_s4 + $0x58] sm:$0xff]  ;;  %v365_v39 = vld [vmem:[%s1811_s4 + $0x50] sm:$0xff] }
  0x13   :  { %v363_v40 = vld [vmem:[%s1811_s4 + $0x40] sm:$0xff]  ;;  %v361_v42 = vld [vmem:[%s1811_s4 + $0x30] sm:$0xff]  ;;  %v364_v43 = vld [vmem:[%s1811_s4 + $0x48] sm:$0xff] }
  0x14   :  { %v362_v44 = vld [vmem:[%s1811_s4 + $0x38] sm:$0xff]  ;;  %v360_v45 = vld [vmem:[%s1811_s4 + $0x28] sm:$0xff]  ;;  %v359_v47 = vld [vmem:[%s1811_s4 + $0x20] sm:$0xff] }
  0x15   :  { %246 = vperm.xlu1 %1298, %v176_v8   ;;  %v357_v48 = vld [vmem:[%s1811_s4 + $0x10] sm:$0xff]  ;;  %v29_v49 = vld [vmem:[%s1807_s0] sm:$0x3]  ;;  %v358_v55 = vld [vmem:[%s1811_s4 + $0x18] sm:$0xff] }
  0x16   :  { %241 = vperm.xlu0 %1297, %v175_v9   ;;  %103 = vperm.xlu2 %1299, %v40_v10   ;;  %v1517_v52 = vperm.slane %v29_v49, 0  ;;  %v1519_v53 = vperm.slane %v29_v49, 1  ;;  %v355_v54 = vld [vmem:[%s1811_s4] sm:$0xff]  ;;  %v356_v56 = vld [vmem:[%s1811_s4 + $0x8] sm:$0xff]  ;;  %v1231_v4 = vld [vmem:[%s1811_s4 + $0x90] sm:$0xff] }
  0x17   :  { %v1230_v2 = vld [vmem:[%s1811_s4 + $0x88] sm:$0xff]  ;;  %v1229_v3 = vld [vmem:[%s1811_s4 + $0x80] sm:$0xff] }
  0x1d   :  { %231 = vperm.xlu1 %1298, %v173_v11  }
  0x1e   :  { %108 = vperm.xlu0 %1297, %v41_v12   ;;  %236 = vperm.xlu2 %1299, %v174_v13  }
  0x25   :  { %98 = vperm.xlu1 %1298, %v39_v14  }
  0x26   :  { %221 = vperm.xlu2 %1299, %v171_v15   ;;  %93 = vperm.xlu0 %1297, %v38_v16  }
  0x2d   :  { %83 = vperm.xlu1 %1298, %v36_v17  }
  0x2e   :  { %226 = vperm.xlu0 %1297, %v172_v18   ;;  %88 = vperm.xlu2 %1299, %v37_v19  }
  0x35   :  { %216 = vperm.xlu1 %1298, %v170_v20  }
  0x36   :  { %211 = vperm.xlu0 %1297, %v169_v21   ;;  %73 = vperm.xlu2 %1299, %v34_v22  }
  0x3d   :  { %201 = vperm.xlu1 %1298, %v167_v23  }
  0x3e   :  { %78 = vperm.xlu0 %1297, %v35_v24   ;;  %206 = vperm.xlu2 %1299, %v168_v25  }
  0x45   :  { %68 = vperm.xlu1 %1298, %v33_v26   ;;  %v1233_v26 = vld [vmem:[%s1811_s4 + $0xa0] sm:$0xff] }
  0x46   :  { %191 = vperm.xlu2 %1299, %v165_v27   ;;  %63 = vperm.xlu0 %1297, %v32_v28  }
  0x4d   :  { %53 = vperm.xlu1 %1298, %v30_v29   ;;  %v1232_v29 = vld [vmem:[%s1811_s4 + $0x98] sm:$0xff] }
  0x4e   :  { %196 = vperm.xlu0 %1297, %v166_v30   ;;  %58 = vperm.xlu2 %1299, %v31_v31   ;;  %v1234_v30 = vld [vmem:[%s1811_s4 + $0xa8] sm:$0xff] }
  0x55   :  { %186 = vperm.xlu1 %1298, %v164_v32  }
  0x56   :  { %181 = vperm.xlu0 %1297, %v163_v33   ;;  %443 = vperm.xlu2 %1299, %v369_v34  }
  0x5d   :  { %433 = vperm.xlu1 %1298, %v367_v35  }
  0x5e   :  { %448 = vperm.xlu0 %1297, %v370_v36   ;;  %438 = vperm.xlu2 %1299, %v368_v37  }
  0x60   :  { %v114_v41 = vpop.permute.xlu2 %113 }
  0x61   :  { %v155_v13 = vmul.f32 %v114_v41, %v1517_v52  ;;  %v156_v14 = vmul.f32 %v114_v41, %v1519_v53 }
  0x65   :  { %428 = vperm.xlu1 %1298, %v366_v38  }
  0x66   :  { %423 = vperm.xlu0 %1297, %v365_v39   ;;  %413 = vperm.xlu2 %1299, %v363_v40  }
  0x68   :  { %v119_v46 = vpop.permute.xlu2 %118 }
  0x69   :  { %v157_v11 = vmul.f32 %v119_v46, %v1517_v52  ;;  %v158_v12 = vmul.f32 %v119_v46, %v1519_v53  ;;  %v1237_v46 = vld [vmem:[%s1811_s4 + $0xc0] sm:$0xff] }
  0x6d   :  { %403 = vperm.xlu1 %1298, %v361_v42   ;;  %v1236_v42 = vld [vmem:[%s1811_s4 + $0xb8] sm:$0xff] }
  0x6e   :  { %418 = vperm.xlu0 %1297, %v364_v43   ;;  %408 = vperm.xlu2 %1299, %v362_v44  }
  0x70   :  { %v104_v57 = vpop.permute.xlu2 %103 }
  0x71   :  { %v151_v33 = vmul.f32 %v104_v57, %v1517_v52  ;;  %v152_v34 = vmul.f32 %v104_v57, %v1519_v53  ;;  %v1239_v57 = vld [vmem:[%s1811_s4 + $0xd0] sm:$0xff] }
  0x75   :  { %398 = vperm.xlu1 %1298, %v360_v45   ;;  %v1235_v45 = vld [vmem:[%s1811_s4 + $0xb0] sm:$0xff] }
  0x76   :  { %393 = vperm.xlu0 %1297, %v359_v47   ;;  %383 = vperm.xlu2 %1299, %v357_v48  }
  0x77   :  { %v252_v50 = vpop.permute.xlu1 %251 }
  0x78   :  { %v124_v51 = vpop.permute.xlu0 %123  ;;  %v237_v15 = vpop.permute.xlu2 %236 }
  0x79   :  { %v159_v58 = vmul.f32 %v124_v51, %v1517_v52  ;;  %v160_v59 = vmul.f32 %v124_v51, %v1519_v53 }
  0x7b   :  { %v287_v0 = vadd.f32 %v252_v50, %v159_v58  ;;  %v288_v1 = vadd.f32 %v252_v50, %v160_v59 }
  0x7d   :  { %373 = vperm.xlu1 %1298, %v355_v54   ;;  %v319_v7 = vmax.f32 %v287_v0, 0.0  ;;  %v320_v9 = vmax.f32 %v288_v1, 0.0 }
  0x7e   :  { %388 = vperm.xlu0 %1297, %v358_v55   ;;  %378 = vperm.xlu2 %1299, %v356_v56  }
  0x7f   :  { %v257_v60 = vpop.permute.xlu1 %256 }
  0x80   :  { %v129_v61 = vpop.permute.xlu0 %128  ;;  %v222_v37 = vpop.permute.xlu2 %221 }
  0x81   :  { %v161_v62 = vmul.f32 %v129_v61, %v1517_v52  ;;  %v162_v63 = vmul.f32 %v129_v61, %v1519_v53  ;;  %v1238_v61 = vld [vmem:[%s1811_s4 + $0xc8] sm:$0xff] }
  0x83   :  { %v289_v5 = vadd.f32 %v257_v60, %v161_v62  ;;  %v290_v6 = vadd.f32 %v257_v60, %v162_v63  ;;  %v1240_v62 = vld [vmem:[%s1811_s4 + $0xd8] sm:$0xff] }
  0x85   :  { %686 = vperm.xlu1 %1298, %v1230_v2   ;;  %v321_v8 = vmax.f32 %v289_v5, 0.0  ;;  %v322_v10 = vmax.f32 %v290_v6, 0.0 }
  0x86   :  { %681 = vperm.xlu0 %1297, %v1229_v3   ;;  %691 = vperm.xlu2 %1299, %v1231_v4  }
  0x87   :  { %v247_v16 = vpop.permute.xlu1 %246  ;;  %v353_v17 = vpack.c.bf16 %v321_v8, %v319_v7  ;;  %v354_v18 = vpack.c.bf16 %v322_v10, %v320_v9  ;;  %v1242_v7 = vld [vmem:[%s1811_s4 + $0xe8] sm:$0xff]  ;;  %v1241_v10 = vld [vmem:[%s1811_s4 + $0xe0] sm:$0xff] }
  0x88   :  { %v285_v19 = vadd.f32 %v247_v16, %v157_v11  ;;  %v286_v20 = vadd.f32 %v247_v16, %v158_v12  ;;  %v242_v21 = vpop.permute.xlu0 %241  ;;  %v89_v58 = vpop.permute.xlu2 %88  ;;  %v937_v11 = vld [vmem:[%s1812_s5] sm:$0xff] }
  0x89   :  { %v283_v22 = vadd.f32 %v242_v21, %v155_v13  ;;  %v284_v23 = vadd.f32 %v242_v21, %v156_v14  ;;  %499 = vmatpush.bf16.msra.mxu0 %v353_v17  ;;  %548 = vmatpush.bf16.msra.mxu1 %v354_v18  ;;  %v145_v17 = vmul.f32 %v89_v58, %v1517_v52 }
  0x8a   :  { %v317_v24 = vmax.f32 %v285_v19, 0.0  ;;  %v318_v25 = vmax.f32 %v286_v20, 0.0  ;;  %v146_v18 = vmul.f32 %v89_v58, %v1519_v53 }
  0x8b   :  { %v315_v27 = vmax.f32 %v283_v22, 0.0  ;;  %v316_v28 = vmax.f32 %v284_v23, 0.0 }
  0x8d   :  { %701 = vperm.xlu1 %1298, %v1233_v26   ;;  %v351_v31 = vpack.c.bf16 %v317_v24, %v315_v27  ;;  %v352_v32 = vpack.c.bf16 %v318_v25, %v316_v28 }
  0x8e   :  { %696 = vperm.xlu0 %1297, %v1232_v29   ;;  %706 = vperm.xlu2 %1299, %v1234_v30   ;;  %v939_v29 = vld [vmem:[%s1812_s5 + $0x10] sm:$0xff] }
  0x8f   :  { %500 = vmatpush.bf16.msra.mxu0 %v351_v31  ;;  %549 = vmatpush.bf16.msra.mxu1 %v352_v32  ;;  %v232_v35 = vpop.permute.xlu1 %231  ;;  %v938_v32 = vld [vmem:[%s1812_s5 + $0x8] sm:$0xff] }
  0x90   :  { %v109_v36 = vpop.permute.xlu0 %108  ;;  %v279_v38 = vadd.f32 %v232_v35, %v151_v33  ;;  %v280_v39 = vadd.f32 %v232_v35, %v152_v34  ;;  %v74_v14 = vpop.permute.xlu2 %73  ;;  %v940_v33 = vld [vmem:[%s1812_s5 + $0x18] sm:$0xff] }
  0x91   :  { %v153_v40 = vmul.f32 %v109_v36, %v1517_v52  ;;  %v154_v41 = vmul.f32 %v109_v36, %v1519_v53  ;;  %v139_v36 = vmul.f32 %v74_v14, %v1517_v52 }
  0x92   :  { %v311_v47 = vmax.f32 %v279_v38, 0.0  ;;  %v312_v48 = vmax.f32 %v280_v39, 0.0 }
  0x93   :  { %v281_v43 = vadd.f32 %v237_v15, %v153_v40  ;;  %v282_v44 = vadd.f32 %v237_v15, %v154_v41 }
  0x95   :  { %716 = vperm.xlu1 %1298, %v1236_v42   ;;  %v313_v49 = vmax.f32 %v281_v43, 0.0  ;;  %v314_v50 = vmax.f32 %v282_v44, 0.0 }
  0x96   :  { %711 = vperm.xlu0 %1297, %v1235_v45   ;;  %721 = vperm.xlu2 %1299, %v1237_v46   ;;  %v942_v45 = vld [vmem:[%s1812_s5 + $0x28] sm:$0xff] }
  0x97   :  { %v99_v51 = vpop.permute.xlu1 %98  ;;  %v349_v54 = vpack.c.bf16 %v313_v49, %v311_v47  ;;  %v350_v55 = vpack.c.bf16 %v314_v50, %v312_v48  ;;  %v941_v48 = vld [vmem:[%s1812_s5 + $0x20] sm:$0xff]  ;;  %v943_v49 = vld [vmem:[%s1812_s5 + $0x30] sm:$0xff] }
  0x98   :  { %v94_v56 = vpop.permute.xlu0 %93  ;;  %v149_v63 = vmul.f32 %v99_v51, %v1517_v52  ;;  %v150_v0 = vmul.f32 %v99_v51, %v1519_v53  ;;  %v207_v38 = vpop.permute.xlu2 %206 }
  0x99   :  { %501 = vmatpush.bf16.msra.mxu0 %v349_v54  ;;  %550 = vmatpush.bf16.msra.mxu1 %v350_v55  ;;  %v147_v59 = vmul.f32 %v94_v56, %v1517_v52  ;;  %v148_v60 = vmul.f32 %v94_v56, %v1519_v53 }
  0x9b   :  { %v275_v1 = vadd.f32 %v222_v37, %v147_v59  ;;  %v276_v2 = vadd.f32 %v222_v37, %v148_v60  ;;  %v140_v37 = vmul.f32 %v74_v14, %v1519_v53  ;;  %v947_v14 = vld [vmem:[%s1812_s5 + $0x50] sm:$0xff] }
  0x9d   :  { %731 = vperm.xlu1 %1298, %v1239_v57   ;;  %v307_v12 = vmax.f32 %v275_v1, 0.0  ;;  %v308_v13 = vmax.f32 %v276_v2, 0.0  ;;  %v946_v1 = vld [vmem:[%s1812_s5 + $0x48] sm:$0xff] }
  0x9e   :  { %726 = vperm.xlu0 %1297, %v1238_v61   ;;  %736 = vperm.xlu2 %1299, %v1240_v62   ;;  %v945_v61 = vld [vmem:[%s1812_s5 + $0x40] sm:$0xff] }
  0x9f   :  { %v84_v3 = vpop.permute.xlu1 %83 }
  0xa0   :  { %v227_v4 = vpop.permute.xlu0 %226  ;;  %v143_v19 = vmul.f32 %v84_v3, %v1517_v52  ;;  %v144_v20 = vmul.f32 %v84_v3, %v1519_v53  ;;  %v192_v60 = vpop.permute.xlu2 %191 }
  0xa1   :  { %v277_v5 = vadd.f32 %v227_v4, %v149_v63  ;;  %v278_v6 = vadd.f32 %v227_v4, %v150_v0  ;;  %v944_v0 = vld [vmem:[%s1812_s5 + $0x38] sm:$0xff] }
  0xa3   :  { %v309_v8 = vmax.f32 %v277_v5, 0.0  ;;  %v310_v9 = vmax.f32 %v278_v6, 0.0 }
  0xa5   :  { %746 = vperm.xlu1 %1298, %v1242_v7   ;;  %v347_v15 = vpack.c.bf16 %v309_v8, %v307_v12  ;;  %v348_v16 = vpack.c.bf16 %v310_v9, %v308_v13 }
  0xa6   :  { %741 = vperm.xlu0 %1297, %v1241_v10   ;;  %955 = vperm.xlu2 %1299, %v937_v11   ;;  %v948_v10 = vld [vmem:[%s1812_s5 + $0x58] sm:$0xff] }
  0xa7   :  { %502 = vmatpush.bf16.msra.mxu0 %v347_v15  ;;  %551 = vmatpush.bf16.msra.mxu1 %v348_v16  ;;  %v217_v21 = vpop.permute.xlu1 %216  ;;  %v1243_v15 = vld [vmem:[%s1811_s4 + $0xf0] sm:$0xff] }
  0xa8   :  { %v212_v22 = vpop.permute.xlu0 %211  ;;  %v273_v23 = vadd.f32 %v217_v21, %v145_v17  ;;  %v274_v24 = vadd.f32 %v217_v21, %v146_v18  ;;  %v59_v11 = vpop.permute.xlu2 %58 }
  0xa9   :  { %v271_v25 = vadd.f32 %v212_v22, %v143_v19  ;;  %v272_v26 = vadd.f32 %v212_v22, %v144_v20  ;;  %v133_v20 = vmul.f32 %v59_v11, %v1517_v52  ;;  %v134_v21 = vmul.f32 %v59_v11, %v1519_v53 }
  0xaa   :  { %v305_v27 = vmax.f32 %v273_v23, 0.0  ;;  %v306_v28 = vmax.f32 %v274_v24, 0.0 }
  0xab   :  { %v303_v30 = vmax.f32 %v271_v25, 0.0  ;;  %v304_v31 = vmax.f32 %v272_v26, 0.0 }
  0xad   :  { %965 = vperm.xlu1 %1298, %v939_v29   ;;  %v345_v34 = vpack.c.bf16 %v305_v27, %v303_v30  ;;  %v346_v35 = vpack.c.bf16 %v306_v28, %v304_v31 }
  0xae   :  { %960 = vperm.xlu0 %1297, %v938_v32   ;;  %970 = vperm.xlu2 %1299, %v940_v33   ;;  %v1244_v32 = vld [vmem:[%s1811_s4 + $0xf8] sm:$0xff] }
  0xaf   :  { %503 = vmatpush.bf16.msra.mxu0 %v345_v34  ;;  %552 = vmatpush.bf16.msra.mxu1 %v346_v35  ;;  %v202_v39 = vpop.permute.xlu1 %201 }
  0xb0   :  { %v79_v40 = vpop.permute.xlu0 %78  ;;  %v267_v41 = vadd.f32 %v202_v39, %v139_v36  ;;  %v268_v42 = vadd.f32 %v202_v39, %v140_v37  ;;  %v1279_v37 = vld [vmem:[%s1810_s3] sm:$0xff]  ;;  %v951_v39 = vld [vmem:[%s1812_s5 + $0x70] sm:$0xff] }
  0xb1   :  { %v141_v43 = vmul.f32 %v79_v40, %v1517_v52  ;;  %v142_v44 = vmul.f32 %v79_v40, %v1519_v53  ;;  %v1107_v40 = vld [vmem:[#allocation2] sm:$0x1] }
  0xb2   :  { %v299_v50 = vmax.f32 %v267_v41, 0.0  ;;  %v300_v51 = vmax.f32 %v268_v42, 0.0  ;;  %v1280_v41 = vld [vmem:[%s1810_s3 + $0x8] sm:$0xff]  ;;  %v1281_v42 = vld [vmem:[%s1810_s3 + $0x10] sm:$0xff] }
  0xb3   :  { %v269_v46 = vadd.f32 %v207_v38, %v141_v43  ;;  %v270_v47 = vadd.f32 %v207_v38, %v142_v44  ;;  %v952_v38 = vld [vmem:[%s1812_s5 + $0x78] sm:$0xff]  ;;  %v1283_v44 = vld [vmem:[%s1810_s3 + $0x20] sm:$0xff] }
  0xb4   :  { %v1282_v43 = vld [vmem:[%s1810_s3 + $0x18] sm:$0xff] }
  0xb5   :  { %980 = vperm.xlu1 %1298, %v942_v45   ;;  %v301_v54 = vmax.f32 %v269_v46, 0.0  ;;  %v302_v55 = vmax.f32 %v270_v47, 0.0  ;;  %v1284_v45 = vld [vmem:[%s1810_s3 + $0x28] sm:$0xff]  ;;  %v1676_v46 = vpop.permute.xlu2 %443 }
  0xb6   :  { %975 = vperm.xlu0 %1297, %v941_v48   ;;  %985 = vperm.xlu2 %1299, %v943_v49   ;;  %v1285_v49 = vld [vmem:[%s1810_s3 + $0x30] sm:$0xff] }
  0xb7   :  { %v69_v56 = vpop.permute.xlu1 %68  ;;  %v343_v57 = vpack.c.bf16 %v301_v54, %v299_v50  ;;  %v344_v58 = vpack.c.bf16 %v302_v55, %v300_v51  ;;  %v1286_v55 = vld [vmem:[%s1810_s3 + $0x38] sm:$0xff] }
  0xb8   :  { %v64_v59 = vpop.permute.xlu0 %63  ;;  %v137_v2 = vmul.f32 %v69_v56, %v1517_v52  ;;  %v138_v3 = vmul.f32 %v69_v56, %v1519_v53 }
  0xb9   :  { %504 = vmatpush.bf16.msra.mxu0 %v343_v57  ;;  %553 = vmatpush.bf16.msra.mxu1 %v344_v58  ;;  %v135_v62 = vmul.f32 %v64_v59, %v1517_v52  ;;  %v136_v63 = vmul.f32 %v64_v59, %v1519_v53 }
  0xbb   :  { %v263_v4 = vadd.f32 %v192_v60, %v135_v62  ;;  %v264_v5 = vadd.f32 %v192_v60, %v136_v63 }
  0xbd   :  { %995 = vperm.xlu1 %1298, %v945_v61   ;;  %v295_v16 = vmax.f32 %v263_v4, 0.0  ;;  %v296_v17 = vmax.f32 %v264_v5, 0.0  ;;  %v1680_v48 = vpop.permute.xlu2 %438 }
  0xbe   :  { %990 = vperm.xlu0 %1297, %v944_v0   ;;  %1000 = vperm.xlu2 %1299, %v946_v1  }
  0xbf   :  { %v54_v6 = vpop.permute.xlu1 %53 }
  0xc0   :  { %v197_v7 = vpop.permute.xlu0 %196  ;;  %v131_v22 = vmul.f32 %v54_v6, %v1517_v52  ;;  %v132_v23 = vmul.f32 %v54_v6, %v1519_v53  ;;  %v949_v52 = vld [vmem:[%s1812_s5 + $0x60] sm:$0xff]  ;;  %v950_v53 = vld [vmem:[%s1812_s5 + $0x68] sm:$0xff] }
  0xc1   :  { %v265_v8 = vadd.f32 %v197_v7, %v137_v2  ;;  %v266_v9 = vadd.f32 %v197_v7, %v138_v3 }
  0xc3   :  { %v297_v12 = vmax.f32 %v265_v8, 0.0  ;;  %v298_v13 = vmax.f32 %v266_v9, 0.0 }
  0xc5   :  { %1010 = vperm.xlu1 %1298, %v948_v10   ;;  %v341_v18 = vpack.c.bf16 %v297_v12, %v295_v16  ;;  %v342_v19 = vpack.c.bf16 %v298_v13, %v296_v17  ;;  %v1687_v51 = vpop.permute.xlu2 %413 }
  0xc6   :  { %1005 = vperm.xlu0 %1297, %v947_v14   ;;  %751 = vperm.xlu2 %1299, %v1243_v15  }
  0xc7   :  { %505 = vmatpush.bf16.msra.mxu0 %v341_v18  ;;  %554 = vmatpush.bf16.msra.mxu1 %v342_v19  ;;  %v187_v24 = vpop.permute.xlu1 %186 }
  0xc8   :  { %v182_v25 = vpop.permute.xlu0 %181  ;;  %v261_v26 = vadd.f32 %v187_v24, %v133_v20  ;;  %v262_v27 = vadd.f32 %v187_v24, %v134_v21 }
  0xc9   :  { %v259_v28 = vadd.f32 %v182_v25, %v131_v22  ;;  %v260_v29 = vadd.f32 %v182_v25, %v132_v23 }
  0xca   :  { %v293_v30 = vmax.f32 %v261_v26, 0.0  ;;  %v294_v31 = vmax.f32 %v262_v27, 0.0 }
  0xcb   :  { %v291_v33 = vmax.f32 %v259_v28, 0.0  ;;  %v292_v34 = vmax.f32 %v260_v29, 0.0 }
  0xcd   :  { %756 = vperm.xlu1 %1298, %v1244_v32   ;;  %v339_v35 = vpack.c.bf16 %v293_v30, %v291_v33  ;;  %v340_v36 = vpack.c.bf16 %v294_v31, %v292_v34  ;;  %v409_v57 = vpop.permute.xlu2 %408 }
  0xce   :  { %1015 = vperm.xlu0 %1297, %v949_v52   ;;  %1020 = vperm.xlu2 %1299, %v950_v53  }
  0xcf   :  { %506 = vmatpush.bf16.msra.mxu0 %v339_v35  ;;  %555 = vmatpush.bf16.msra.mxu1 %v340_v36  ;;  %v1678_v47 = vpop.permute.xlu1 %433 }
  0xd0   :  { %v1689_v54 = vpop.permute.xlu0 %448 }
  0xd2   :  { %507 = vmatmul.bf16.vlgmr.msra.gmra.mxu0 %v1279_v37  ;;  %556 = vmatmul.bf16.vlgmr.msra.gmra.mxu1 %v1279_v37 }
  0xd5   :  { %1030 = vperm.xlu1 %1298, %v952_v38   ;;  %v384_v60 = vpop.permute.xlu2 %383 }
  0xd6   :  { %1025 = vperm.xlu0 %1297, %v951_v39   ;;  %1110 = vperm.xlu2 %1299, %v1107_v40  }
  0xd7   :  { %v1685_v50 = vpop.permute.xlu1 %428 }
  0xd8   :  { %v1694_v58 = vpop.permute.xlu0 %423 }
  0xdd   :  { %v379_v1 = vpop.permute.xlu2 %378 }
  0xdf   :  { %v404_v56 = vpop.permute.xlu1 %403 }
  0xe0   :  { %v1696_v63 = vpop.permute.xlu0 %418 }
  0xe2   :  { %512 = vmatmul.bf16.gmra.mxu0 %v1280_v41  ;;  %561 = vmatmul.bf16.gmra.mxu1 %v1280_v41 }
  0xe7   :  { %v399_v59 = vpop.permute.xlu1 %398 }
  0xe8   :  { %v394_v12 = vpop.permute.xlu0 %393 }
  0xef   :  { %v374_v0 = vpop.permute.xlu1 %373 }
  0xf0   :  { %v389_v17 = vpop.permute.xlu0 %388 }
  0xf2   :  { %517 = vmatmul.bf16.gmra.mxu0 %v1281_v42  ;;  %566 = vmatmul.bf16.gmra.mxu1 %v1281_v42 }
 0x102   :  { %522 = vmatmul.bf16.gmra.mxu0 %v1282_v43  ;;  %571 = vmatmul.bf16.gmra.mxu1 %v1282_v43 }
 0x112   :  { %527 = vmatmul.bf16.gmra.mxu0 %v1283_v44  ;;  %576 = vmatmul.bf16.gmra.mxu1 %v1283_v44 }
 0x122   :  { %532 = vmatmul.bf16.gmra.mxu0 %v1284_v45  ;;  %581 = vmatmul.bf16.gmra.mxu1 %v1284_v45 }
 0x132   :  { %537 = vmatmul.bf16.gmra.mxu0 %v1285_v49  ;;  %586 = vmatmul.bf16.gmra.mxu1 %v1285_v49 }
 0x142   :  { %542 = vmatmul.bf16.gmra.mxu0 %v1286_v55  ;;  %591 = vmatmul.bf16.gmra.mxu1 %v1286_v55 }
 0x14f   :  { %v508_v61 = vpop.f32.mrf.mxu0  ;;  %v557_v62 = vpop.f32.mrf.mxu1 }
 0x150   :  { %v509_v2 = vadd.f32 %v508_v61, %v374_v0  ;;  %v558_v3 = vadd.f32 %v557_v62, %v374_v0 }
 0x152   :  { %v597_v8 = vmax.f32 %v509_v2, 0.0  ;;  %v598_v9 = vmax.f32 %v558_v3, 0.0 }
 0x157   :  { %v510_v4 = vpop.f32.mrf.mxu0  ;;  %v559_v5 = vpop.f32.mrf.mxu1 }
 0x158   :  { %v511_v6 = vadd.f32 %v510_v4, %v379_v1  ;;  %v560_v7 = vadd.f32 %v559_v5, %v379_v1 }
 0x15a   :  { %v599_v10 = vmax.f32 %v511_v6, 0.0  ;;  %v600_v11 = vmax.f32 %v560_v7, 0.0 }
 0x15c   :  { %v1698_v13 = vpack.c.bf16 %v599_v10, %v597_v8  ;;  %v1700_v14 = vpack.c.bf16 %v600_v11, %v598_v9 }
 0x15f   :  { %v513_v15 = vpop.f32.mrf.mxu0  ;;  %v562_v16 = vpop.f32.mrf.mxu1 }
 0x160   :  { %v514_v18 = vadd.f32 %v513_v15, %v384_v60  ;;  %v563_v19 = vadd.f32 %v562_v16, %v384_v60 }
 0x162   :  { %v601_v24 = vmax.f32 %v514_v18, 0.0  ;;  %v602_v25 = vmax.f32 %v563_v19, 0.0 }
 0x167   :  { %v515_v20 = vpop.f32.mrf.mxu0  ;;  %v564_v21 = vpop.f32.mrf.mxu1 }
 0x168   :  { %v516_v22 = vadd.f32 %v515_v20, %v389_v17  ;;  %v565_v23 = vadd.f32 %v564_v21, %v389_v17 }
 0x16a   :  { %v603_v26 = vmax.f32 %v516_v22, 0.0  ;;  %v604_v27 = vmax.f32 %v565_v23, 0.0 }
 0x16c   :  { %v1702_v28 = vpack.c.bf16 %v603_v26, %v601_v24  ;;  %v1704_v29 = vpack.c.bf16 %v604_v27, %v602_v25 }
 0x16f   :  { %v518_v30 = vpop.f32.mrf.mxu0  ;;  %v567_v31 = vpop.f32.mrf.mxu1 }
 0x170   :  { %v519_v32 = vadd.f32 %v518_v30, %v394_v12  ;;  %v568_v33 = vadd.f32 %v567_v31, %v394_v12 }
 0x172   :  { %v605_v36 = vmax.f32 %v519_v32, 0.0  ;;  %v606_v37 = vmax.f32 %v568_v33, 0.0 }
 0x177   :  { %v520_v34 = vpop.f32.mrf.mxu0  ;;  %v569_v52 = vpop.f32.mrf.mxu1 }
 0x178   :  { %v521_v53 = vadd.f32 %v520_v34, %v399_v59  ;;  %v570_v35 = vadd.f32 %v569_v52, %v399_v59 }
 0x17a   :  { %v607_v38 = vmax.f32 %v521_v53, 0.0  ;;  %v608_v39 = vmax.f32 %v570_v35, 0.0 }
 0x17c   :  { %v1706_v40 = vpack.c.bf16 %v607_v38, %v605_v36  ;;  %v1708_v41 = vpack.c.bf16 %v608_v39, %v606_v37 }
 0x17f   :  { %v523_v42 = vpop.f32.mrf.mxu0  ;;  %v572_v43 = vpop.f32.mrf.mxu1 }
 0x180   :  { %v524_v44 = vadd.f32 %v523_v42, %v404_v56  ;;  %v573_v45 = vadd.f32 %v572_v43, %v404_v56 }
 0x182   :  { %v609_v62 = vmax.f32 %v524_v44, 0.0  ;;  %v610_v0 = vmax.f32 %v573_v45, 0.0 }
 0x187   :  { %v525_v49 = vpop.f32.mrf.mxu0  ;;  %v574_v55 = vpop.f32.mrf.mxu1 }
 0x188   :  { %v526_v60 = vadd.f32 %v525_v49, %v409_v57  ;;  %v575_v61 = vadd.f32 %v574_v55, %v409_v57 }
 0x18a   :  { %v611_v1 = vmax.f32 %v526_v60, 0.0  ;;  %v612_v59 = vmax.f32 %v575_v61, 0.0 }
 0x18c   :  { %v1710_v2 = vpack.c.bf16 %v611_v1, %v609_v62  ;;  %v1712_v3 = vpack.c.bf16 %v612_v59, %v610_v0 }
 0x18f   :  { %v528_v4 = vpop.f32.mrf.mxu0  ;;  %v577_v5 = vpop.f32.mrf.mxu1 }
 0x190   :  { %v529_v45 = vadd.f32 %v528_v4, %v1687_v51  ;;  %v578_v49 = vadd.f32 %v577_v5, %v1687_v51  ;;  %v1287_v51 = vld [vmem:[%s1810_s3 + $0x40] sm:$0xff]  ;;  %v692_v4 = vpop.permute.xlu2 %691 }
 0x192   :  { %v613_v1 = vmax.f32 %v529_v45, 0.0  ;;  %v614_v59 = vmax.f32 %v578_v49, 0.0 }
 0x197   :  { %v530_v6 = vpop.f32.mrf.mxu0  ;;  %v579_v7 = vpop.f32.mrf.mxu1 }
 0x198   :  { %v580_v39 = vadd.f32 %v579_v7, %v1696_v63  ;;  %v1294_v7 = vld [vmem:[%s1810_s3 + $0x78] sm:$0xff] }
 0x19a   :  { %v616_v61 = vmax.f32 %v580_v39, 0.0 }
 0x19f   :  { %v533_v8 = vpop.f32.mrf.mxu0  ;;  %v582_v9 = vpop.f32.mrf.mxu1 }
 0x1a0   :  { %v534_v36 = vadd.f32 %v533_v8, %v1694_v58 }
 0x1a2   :  { %v617_v55 = vmax.f32 %v534_v36, 0.0 }
 0x1a7   :  { %v535_v10 = vpop.f32.mrf.mxu0  ;;  %v584_v56 = vpop.f32.mrf.mxu1 }
 0x1a8   :  { %v585_v34 = vadd.f32 %v584_v56, %v1685_v50 }
 0x1aa   :  { %v620_v43 = vmax.f32 %v585_v34, 0.0 }
 0x1af   :  { %v538_v11 = vpop.f32.mrf.mxu0  ;;  %v587_v12 = vpop.f32.mrf.mxu1 }
 0x1b0   :  { %v539_v26 = vadd.f32 %v538_v11, %v1678_v47  ;;  %v588_v27 = vadd.f32 %v587_v12, %v1678_v47  ;;  %v531_v47 = vadd.f32 %v530_v6, %v1696_v63  ;;  %v655_v6 = vpack.c.bf16 %v616_v61, %v614_v59 }
 0x1b2   :  { %v621_v37 = vmax.f32 %v539_v26, 0.0  ;;  %v622_v38 = vmax.f32 %v588_v27, 0.0 }
 0x1b7   :  { %v540_v15 = vpop.f32.mrf.mxu0  ;;  %v589_v57 = vpop.f32.mrf.mxu1 }
 0x1b8   :  { %v541_v22 = vadd.f32 %v540_v15, %v1680_v48  ;;  %v590_v23 = vadd.f32 %v589_v57, %v1680_v48 }
 0x1ba   :  { %v623_v52 = vmax.f32 %v541_v22, 0.0  ;;  %v624_v53 = vmax.f32 %v590_v23, 0.0 }
 0x1bc   :  { %v658_v44 = vpack.c.bf16 %v623_v52, %v621_v37 }
 0x1bf   :  { %v543_v16 = vpop.f32.mrf.mxu0  ;;  %v592_v17 = vpop.f32.mrf.mxu1 }
 0x1c0   :  { %v544_v18 = vadd.f32 %v543_v16, %v1676_v46  ;;  %v593_v19 = vadd.f32 %v592_v17, %v1676_v46  ;;  %v536_v46 = vadd.f32 %v535_v10, %v1685_v50  ;;  %v659_v50 = vpack.c.bf16 %v624_v53, %v622_v38 }
 0x1c2   :  { %v625_v30 = vmax.f32 %v544_v18, 0.0  ;;  %v626_v31 = vmax.f32 %v593_v19, 0.0  ;;  %v619_v42 = vmax.f32 %v536_v46, 0.0 }
 0x1c4   :  { %v656_v62 = vpack.c.bf16 %v619_v42, %v617_v55 }
 0x1c7   :  { %v545_v20 = vpop.f32.mrf.mxu0  ;;  %v594_v21 = vpop.f32.mrf.mxu1 }
 0x1c8   :  { %v546_v24 = vadd.f32 %v545_v20, %v1689_v54  ;;  %v595_v25 = vadd.f32 %v594_v21, %v1689_v54  ;;  %v583_v54 = vadd.f32 %v582_v9, %v1694_v58  ;;  %v615_v58 = vmax.f32 %v531_v47, 0.0  ;;  %v1762_v9 = vpop.permute.xlu2 %706 }
 0x1ca   :  { %v627_v32 = vmax.f32 %v546_v24, 0.0  ;;  %v628_v33 = vmax.f32 %v595_v25, 0.0  ;;  %v618_v60 = vmax.f32 %v583_v54, 0.0  ;;  %v654_v63 = vpack.c.bf16 %v615_v58, %v613_v1 }
 0x1cc   :  { %v660_v35 = vpack.c.bf16 %v627_v32, %v625_v30  ;;  %v661_v48 = vpack.c.bf16 %v628_v33, %v626_v31  ;;  %v657_v0 = vpack.c.bf16 %v620_v43, %v618_v60 }
 0x1ce   :  { %807 = vmatpush.bf16.msra.mxu2 %v660_v35  ;;  %856 = vmatpush.bf16.msra.mxu3 %v661_v48 }
 0x1d0   :  { %v1768_v11 = vpop.permute.xlu2 %721 }
 0x1d2   :  { %808 = vmatpush.bf16.msra.mxu2 %v658_v44  ;;  %857 = vmatpush.bf16.msra.mxu3 %v659_v50 }
 0x1d6   :  { %809 = vmatpush.bf16.msra.mxu2 %v656_v62  ;;  %858 = vmatpush.bf16.msra.mxu3 %v657_v0 }
 0x1d8   :  { %v1774_v17 = vpop.permute.xlu2 %736 }
 0x1da   :  { %810 = vmatpush.bf16.msra.mxu2 %v654_v63  ;;  %859 = vmatpush.bf16.msra.mxu3 %v655_v6 }
 0x1de   :  { %811 = vmatpush.bf16.msra.mxu2 %v1710_v2  ;;  %860 = vmatpush.bf16.msra.mxu3 %v1712_v3  ;;  %v682_v2 = vpop.permute.xlu0 %681  ;;  %v687_v3 = vpop.permute.xlu1 %686 }
 0x1e0   :  { %v956_v32 = vpop.permute.xlu2 %955 }
 0x1e2   :  { %812 = vmatpush.bf16.msra.mxu2 %v1706_v40  ;;  %861 = vmatpush.bf16.msra.mxu3 %v1708_v41  ;;  %v1288_v40 = vld [vmem:[%s1810_s3 + $0x48] sm:$0xff]  ;;  %v1293_v41 = vld [vmem:[%s1810_s3 + $0x70] sm:$0xff] }
 0x1e6   :  { %813 = vmatpush.bf16.msra.mxu2 %v1702_v28  ;;  %862 = vmatpush.bf16.msra.mxu3 %v1704_v29  ;;  %v1289_v28 = vld [vmem:[%s1810_s3 + $0x50] sm:$0xff]  ;;  %v1292_v29 = vld [vmem:[%s1810_s3 + $0x68] sm:$0xff]  ;;  %v697_v5 = vpop.permute.xlu0 %696  ;;  %v702_v8 = vpop.permute.xlu1 %701 }
 0x1e8   :  { %v971_v0 = vpop.permute.xlu2 %970 }
 0x1ea   :  { %814 = vmatpush.bf16.msra.mxu2 %v1698_v13  ;;  %863 = vmatpush.bf16.msra.mxu3 %v1700_v14  ;;  %v1290_v13 = vld [vmem:[%s1810_s3 + $0x58] sm:$0xff]  ;;  %v1291_v14 = vld [vmem:[%s1810_s3 + $0x60] sm:$0xff]  ;;  %s1335_s3 = smov [#allocation3]  }
 0x1eb   :  { %s1170_s11 = sshll.u32 %s1335_s3, 4  ;;  %s1171_s11 = int_to_ptr.vmem [resolvable:$true] %s1170_s11 }
 0x1ed   :  { %815 = vmatmul.bf16.vlgmr.msra.gmra.mxu2 %v1287_v51  ;;  %864 = vmatmul.bf16.vlgmr.msra.gmra.mxu3 %v1287_v51 }
 0x1ee   :  { %v1764_v10 = vpop.permute.xlu0 %711  ;;  %v1766_v56 = vpop.permute.xlu1 %716 }
 0x1f6   :  { %v1770_v12 = vpop.permute.xlu0 %726  ;;  %v1772_v15 = vpop.permute.xlu1 %731 }
 0x1fd   :  { %820 = vmatmul.bf16.gmra.mxu2 %v1288_v40  ;;  %869 = vmatmul.bf16.gmra.mxu3 %v1288_v40 }
 0x1fe   :  { %v1776_v18 = vpop.permute.xlu0 %741  ;;  %v1778_v27 = vpop.permute.xlu1 %746 }
 0x206   :  { %v961_v33 = vpop.permute.xlu0 %960  ;;  %v966_v42 = vpop.permute.xlu1 %965 }
 0x20d   :  { %825 = vmatmul.bf16.gmra.mxu2 %v1289_v28  ;;  %874 = vmatmul.bf16.gmra.mxu3 %v1289_v28 }
 0x21d   :  { %830 = vmatmul.bf16.gmra.mxu2 %v1290_v13  ;;  %879 = vmatmul.bf16.gmra.mxu3 %v1290_v13 }
 0x22d   :  { %835 = vmatmul.bf16.gmra.mxu2 %v1291_v14  ;;  %884 = vmatmul.bf16.gmra.mxu3 %v1291_v14 }
 0x23d   :  { %840 = vmatmul.bf16.gmra.mxu2 %v1292_v29  ;;  %889 = vmatmul.bf16.gmra.mxu3 %v1292_v29 }
 0x24d   :  { %845 = vmatmul.bf16.gmra.mxu2 %v1293_v41  ;;  %894 = vmatmul.bf16.gmra.mxu3 %v1293_v41  ;;  %v976_v41 = vpop.permute.xlu0 %975 }
 0x25d   :  { %850 = vmatmul.bf16.gmra.mxu2 %v1294_v7  ;;  %899 = vmatmul.bf16.gmra.mxu3 %v1294_v7 }
 0x270   :  { %v816_v57 = vpop.f32.mrf.mxu2  ;;  %v865_v16 = vpop.f32.mrf.mxu3 }
 0x271   :  { %v817_v19 = vadd.f32 %v816_v57, %v682_v2  ;;  %v866_v20 = vadd.f32 %v865_v16, %v682_v2 }
 0x273   :  { %v905_v23 = vmax.f32 %v817_v19, 0.0  ;;  %v906_v24 = vmax.f32 %v866_v20, 0.0 }
 0x275   :  { %v1033_v46 = vmul.f32 %v956_v32, %v905_v23  ;;  %v1034_v34 = vmul.f32 %v956_v32, %v906_v24 }
 0x278   :  { %v818_v21 = vpop.f32.mrf.mxu2  ;;  %v867_v22 = vpop.f32.mrf.mxu3 }
 0x279   :  { %v819_v25 = vadd.f32 %v818_v21, %v687_v3  ;;  %v868_v26 = vadd.f32 %v867_v22, %v687_v3 }
 0x27b   :  { %v907_v30 = vmax.f32 %v819_v25, 0.0  ;;  %v908_v31 = vmax.f32 %v868_v26, 0.0 }
 0x27d   :  { %v1035_v52 = vmul.f32 %v961_v33, %v907_v30  ;;  %v1036_v53 = vmul.f32 %v961_v33, %v908_v31  ;;  %v986_v31 = vpop.permute.xlu2 %985 }
 0x27f   :  { %v1065_v35 = vadd.f32 %v1035_v52, %v1033_v46  ;;  %v1086_v48 = vadd.f32 %v1036_v53, %v1034_v34  ;;  %v991_v46 = vpop.permute.xlu0 %990 }
 0x280   :  { %v821_v36 = vpop.f32.mrf.mxu2  ;;  %v870_v54 = vpop.f32.mrf.mxu3 }
 0x281   :  { %v822_v37 = vadd.f32 %v821_v36, %v692_v4  ;;  %v871_v38 = vadd.f32 %v870_v54, %v692_v4 }
 0x283   :  { %v909_v47 = vmax.f32 %v822_v37, 0.0  ;;  %v910_v39 = vmax.f32 %v871_v38, 0.0 }
 0x285   :  { %v1037_v43 = vmul.f32 %v966_v42, %v909_v47  ;;  %v1038_v44 = vmul.f32 %v966_v42, %v910_v39  ;;  %v1001_v42 = vpop.permute.xlu2 %1000 }
 0x287   :  { %v1066_v50 = vadd.f32 %v1065_v35, %v1037_v43  ;;  %v1087_v45 = vadd.f32 %v1086_v48, %v1038_v44  ;;  %v1006_v43 = vpop.permute.xlu0 %1005 }
 0x288   :  { %v823_v49 = vpop.f32.mrf.mxu2  ;;  %v872_v55 = vpop.f32.mrf.mxu3 }
 0x289   :  { %v824_v60 = vadd.f32 %v823_v49, %v697_v5  ;;  %v873_v58 = vadd.f32 %v872_v55, %v697_v5 }
 0x28b   :  { %v911_v61 = vmax.f32 %v824_v60, 0.0  ;;  %v912_v62 = vmax.f32 %v873_v58, 0.0 }
 0x28d   :  { %v1039_v1 = vmul.f32 %v971_v0, %v911_v61  ;;  %v1040_v59 = vmul.f32 %v971_v0, %v912_v62 }
 0x28f   :  { %v1067_v63 = vadd.f32 %v1066_v50, %v1039_v1  ;;  %v1088_v6 = vadd.f32 %v1087_v45, %v1040_v59 }
 0x290   :  { %v826_v51 = vpop.f32.mrf.mxu2  ;;  %v875_v40 = vpop.f32.mrf.mxu3 }
 0x291   :  { %v827_v28 = vadd.f32 %v826_v51, %v702_v8  ;;  %v876_v13 = vadd.f32 %v875_v40, %v702_v8  ;;  %v981_v8 = vpop.permute.xlu1 %980 }
 0x293   :  { %v913_v14 = vmax.f32 %v827_v28, 0.0  ;;  %v914_v29 = vmax.f32 %v876_v13, 0.0 }
 0x295   :  { %v1041_v2 = vmul.f32 %v976_v41, %v913_v14  ;;  %v1042_v3 = vmul.f32 %v976_v41, %v914_v29 }
 0x297   :  { %v1068_v4 = vadd.f32 %v1067_v63, %v1041_v2  ;;  %v1089_v7 = vadd.f32 %v1088_v6, %v1042_v3 }
 0x298   :  { %v828_v57 = vpop.f32.mrf.mxu2  ;;  %v877_v5 = vpop.f32.mrf.mxu3 }
 0x299   :  { %v996_v34 = vpop.permute.xlu1 %995  ;;  %v829_v52 = vadd.f32 %v828_v57, %v1762_v9  ;;  %v878_v53 = vadd.f32 %v877_v5, %v1762_v9 }
 0x29b   :  { %v915_v37 = vmax.f32 %v829_v52, 0.0  ;;  %v916_v38 = vmax.f32 %v878_v53, 0.0 }
 0x29d   :  { %v1043_v49 = vmul.f32 %v981_v8, %v915_v37  ;;  %v1044_v55 = vmul.f32 %v981_v8, %v916_v38 }
 0x29f   :  { %v1090_v28 = vadd.f32 %v1089_v7, %v1044_v55  ;;  %v1016_v7 = vpop.permute.xlu0 %1015 }
 0x2a0   :  { %v831_v16 = vpop.f32.mrf.mxu2  ;;  %v880_v19 = vpop.f32.mrf.mxu3 }
 0x2a1   :  { %v832_v35 = vadd.f32 %v831_v16, %v1764_v10  ;;  %v881_v48 = vadd.f32 %v880_v19, %v1764_v10  ;;  %v1011_v62 = vpop.permute.xlu1 %1010  ;;  %v752_v19 = vpop.permute.xlu2 %751 }
 0x2a3   :  { %v917_v44 = vmax.f32 %v832_v35, 0.0  ;;  %v918_v50 = vmax.f32 %v881_v48, 0.0 }
 0x2a5   :  { %v1045_v0 = vmul.f32 %v986_v31, %v917_v44  ;;  %v1046_v1 = vmul.f32 %v986_v31, %v918_v50 }
 0x2a7   :  { %v1091_v57 = vadd.f32 %v1090_v28, %v1046_v1 }
 0x2a8   :  { %v833_v20 = vpop.f32.mrf.mxu2  ;;  %v882_v21 = vpop.f32.mrf.mxu3 }
 0x2a9   :  { %v834_v47 = vadd.f32 %v833_v20, %v1766_v56  ;;  %v883_v39 = vadd.f32 %v882_v21, %v1766_v56 }
 0x2ab   :  { %v919_v60 = vmax.f32 %v834_v47, 0.0  ;;  %v920_v10 = vmax.f32 %v883_v39, 0.0 }
 0x2ad   :  { %v1047_v13 = vmul.f32 %v991_v46, %v919_v60  ;;  %v1048_v14 = vmul.f32 %v991_v46, %v920_v10  ;;  %v1026_v10 = vpop.permute.xlu0 %1025 }
 0x2b0   :  { %v836_v22 = vpop.f32.mrf.mxu2  ;;  %v885_v23 = vpop.f32.mrf.mxu3 }
 0x2b1   :  { %v837_v45 = vadd.f32 %v836_v22, %v1768_v11  ;;  %v886_v9 = vadd.f32 %v885_v23, %v1768_v11  ;;  %v1069_v11 = vadd.f32 %v1068_v4, %v1043_v49  ;;  %v1092_v23 = vadd.f32 %v1091_v57, %v1048_v14 }
 0x2b3   :  { %v921_v56 = vmax.f32 %v837_v45, 0.0  ;;  %v922_v59 = vmax.f32 %v886_v9, 0.0  ;;  %v1070_v3 = vadd.f32 %v1069_v11, %v1045_v0 }
 0x2b5   :  { %v1049_v5 = vmul.f32 %v996_v34, %v921_v56  ;;  %v1050_v16 = vmul.f32 %v996_v34, %v922_v59  ;;  %v1071_v22 = vadd.f32 %v1070_v3, %v1047_v13 }
 0x2b7   :  { %v1072_v8 = vadd.f32 %v1071_v22, %v1049_v5 }
 0x2b8   :  { %v838_v24 = vpop.f32.mrf.mxu2  ;;  %v887_v25 = vpop.f32.mrf.mxu3 }
 0x2b9   :  { %v839_v58 = vadd.f32 %v838_v24, %v1770_v12  ;;  %v888_v61 = vadd.f32 %v887_v25, %v1770_v12 }
 0x2bb   :  { %v923_v29 = vmax.f32 %v839_v58, 0.0  ;;  %v924_v41 = vmax.f32 %v888_v61, 0.0 }
 0x2bd   :  { %v1051_v24 = vmul.f32 %v1001_v42, %v923_v29  ;;  %v1052_v25 = vmul.f32 %v1001_v42, %v924_v41 }
 0x2c0   :  { %v841_v26 = vpop.f32.mrf.mxu2  ;;  %v890_v30 = vpop.f32.mrf.mxu3 }
 0x2c1   :  { %v842_v63 = vadd.f32 %v841_v26, %v1772_v15  ;;  %v891_v6 = vadd.f32 %v890_v30, %v1772_v15 }
 0x2c3   :  { %v925_v20 = vmax.f32 %v842_v63, 0.0  ;;  %v926_v21 = vmax.f32 %v891_v6, 0.0 }
 0x2c5   :  { %v1054_v46 = vmul.f32 %v1006_v43, %v926_v21 }
 0x2c8   :  { %v843_v32 = vpop.f32.mrf.mxu2  ;;  %v892_v33 = vpop.f32.mrf.mxu3 }
 0x2c9   :  { %v844_v2 = vadd.f32 %v843_v32, %v1774_v17  ;;  %v893_v12 = vadd.f32 %v892_v33, %v1774_v17  ;;  %v1093_v17 = vadd.f32 %v1092_v23, %v1050_v16  ;;  %v1053_v33 = vmul.f32 %v1006_v43, %v925_v20  ;;  %v1021_v43 = vpop.permute.xlu2 %1020 }
 0x2cb   :  { %v927_v26 = vmax.f32 %v844_v2, 0.0  ;;  %v928_v30 = vmax.f32 %v893_v12, 0.0  ;;  %v1094_v37 = vadd.f32 %v1093_v17, %v1052_v25 }
 0x2cd   :  { %v1055_v38 = vmul.f32 %v1011_v62, %v927_v26  ;;  %v1056_v47 = vmul.f32 %v1011_v62, %v928_v30  ;;  %v1095_v50 = vadd.f32 %v1094_v37, %v1054_v46 }
 0x2cf   :  { %v1096_v60 = vadd.f32 %v1095_v50, %v1056_v47 }
 0x2d0   :  { %v846_v36 = vpop.f32.mrf.mxu2  ;;  %v895_v54 = vpop.f32.mrf.mxu3 }
 0x2d1   :  { %v847_v15 = vadd.f32 %v846_v36, %v1776_v18  ;;  %v896_v4 = vadd.f32 %v895_v54, %v1776_v18  ;;  %v757_v36 = vpop.permute.xlu1 %756  ;;  %v1073_v54 = vadd.f32 %v1072_v8, %v1051_v24  ;;  %v1111_v22 = vpop.permute.xlu2 %1110 }
 0x2d2   :  { %v1113_v25 = vperm.slane %v1111_v22, 0 }
 0x2d3   :  { %v929_v34 = vmax.f32 %v847_v15, 0.0  ;;  %v930_v52 = vmax.f32 %v896_v4, 0.0  ;;  %v1074_v44 = vadd.f32 %v1073_v54, %v1053_v33 }
 0x2d5   :  { %v1057_v45 = vmul.f32 %v1016_v7, %v929_v34  ;;  %v1058_v9 = vmul.f32 %v1016_v7, %v930_v52  ;;  %v1075_v55 = vadd.f32 %v1074_v44, %v1055_v38 }
 0x2d7   :  { %v1076_v0 = vadd.f32 %v1075_v55, %v1057_v45  ;;  %v1097_v1 = vadd.f32 %v1096_v60, %v1058_v9 }
 0x2d8   :  { %v848_v51 = vpop.f32.mrf.mxu2  ;;  %v897_v40 = vpop.f32.mrf.mxu3 }
 0x2d9   :  { %v849_v31 = vadd.f32 %v848_v51, %v1778_v27  ;;  %v898_v32 = vadd.f32 %v897_v40, %v1778_v27  ;;  %v1031_v14 = vpop.permute.xlu1 %1030 }
 0x2db   :  { %v931_v39 = vmax.f32 %v849_v31, 0.0  ;;  %v932_v42 = vmax.f32 %v898_v32, 0.0 }
 0x2dd   :  { %v1059_v58 = vmul.f32 %v1021_v43, %v931_v39  ;;  %v1060_v61 = vmul.f32 %v1021_v43, %v932_v42 }
 0x2df   :  { %v1077_v40 = vadd.f32 %v1076_v0, %v1059_v58  ;;  %v1098_v11 = vadd.f32 %v1097_v1, %v1060_v61 }
 0x2e0   :  { %v851_v53 = vpop.f32.mrf.mxu2  ;;  %v900_v35 = vpop.f32.mrf.mxu3 }
 0x2e1   :  { %v852_v18 = vadd.f32 %v851_v53, %v752_v19  ;;  %v901_v48 = vadd.f32 %v900_v35, %v752_v19 }
 0x2e3   :  { %v933_v27 = vmax.f32 %v852_v18, 0.0  ;;  %v934_v49 = vmax.f32 %v901_v48, 0.0 }
 0x2e5   :  { %v1061_v63 = vmul.f32 %v1026_v10, %v933_v27  ;;  %v1062_v62 = vmul.f32 %v1026_v10, %v934_v49  ;;  %v1160_v27 = vlaneseq }
 0x2e7   :  { %v1078_v29 = vadd.f32 %v1077_v40, %v1061_v63  ;;  %v1099_v41 = vadd.f32 %v1098_v11, %v1062_v62  ;;  %vm1162_vm9 = vcmp.lt.s32.totalorder %v1160_v27, 256 }
 0x2e8   :  { %v853_v56 = vpop.f32.mrf.mxu2  ;;  %v902_v59 = vpop.f32.mrf.mxu3 }
 0x2e9   :  { %v854_v6 = vadd.f32 %v853_v56, %v757_v36  ;;  %v903_v51 = vadd.f32 %v902_v59, %v757_v36 }
 0x2eb   :  { %v935_v28 = vmax.f32 %v854_v6, 0.0  ;;  %v936_v13 = vmax.f32 %v903_v51, 0.0 }
 0x2ed   :  { %v1063_v2 = vmul.f32 %v1031_v14, %v935_v28  ;;  %v1064_v12 = vmul.f32 %v1031_v14, %v936_v13 }
 0x2ef   :  { %v1079_v3 = vadd.f32 %v1078_v29, %v1063_v2  ;;  %v1100_v57 = vadd.f32 %v1099_v41, %v1064_v12 }
 0x2f1   :  { %v1080_v5 = vrot.slane %v1079_v3, 4  ;;  %v1101_v16 = vrot.slane %v1100_v57, 4 }
 0x2f3   :  { %v1081_v19 = vadd.f32 %v1080_v5, %v1079_v3  ;;  %v1102_v20 = vadd.f32 %v1101_v16, %v1100_v57 }
 0x2f5   :  { %v1082_v21 = vrot.slane %v1081_v19, 2  ;;  %v1103_v15 = vrot.slane %v1102_v20, 2 }
 0x2f7   :  { %v1083_v4 = vadd.f32 %v1082_v21, %v1081_v19  ;;  %v1104_v7 = vadd.f32 %v1103_v15, %v1102_v20 }
 0x2f9   :  { %v1084_v23 = vrot.slane %v1083_v4, 1  ;;  %v1105_v24 = vrot.slane %v1104_v7, 1 }
 0x2fb   :  { %v1085_v26 = vadd.f32 %v1084_v23, %v1083_v4  ;;  %v1106_v30 = vadd.f32 %v1105_v24, %v1104_v7 }
 0x2fd   :  { %v1114_v8 = vadd.f32 %v1113_v25, %v1085_v26  ;;  %v1115_v17 = vadd.f32 %v1113_v25, %v1106_v30 }
 0x2ff   :  { %v1277_v31 = vmul.f32 -1.442695, %v1114_v8  ;;  %v1278_v32 = vmul.f32 -1.442695, %v1115_v17 }
 0x301   :  { %1300 = vpow2.f32 %v1277_v31 }
 0x302   :  { %1302 = vpow2.f32 %v1278_v32 }
 0x307   :  { %v1301_v33 = vpop.eup %1300 }
 0x308   :  { %v1303_v46 = vpop.eup %1302  ;;  %v1122_v34 = vadd.f32 1.0, %v1301_v33 }
 0x309   :  { %v1123_v52 = vadd.f32 1.0, %v1303_v46 }
 0x30a   :  { %1304 = vrcp.f32 %v1122_v34  ;;  %vm1129_vm2 = vweird.f32 %v1122_v34  ;;  %v1135_v44 = vand.u32 2147483648, %v1122_v34  ;;  %v1133_v45 = vand.u32 2147483647, %v1122_v34 }
 0x30b   :  { %1306 = vrcp.f32 %v1123_v52  ;;  %v1150_v38 = vand.u32 2147483648, %v1123_v52  ;;  %v1148_v39 = vand.u32 2147483647, %v1123_v52  ;;  %vm1144_vm4 = vweird.f32 %v1123_v52 }
 0x30c   :  { %v1136_v60 = vor.u32 1.1754944e-38, %v1135_v44  ;;  %vm1134_vm8 = vcmp.eq.f32.partialorder %v1133_v45, 8.507059e+37 }
 0x30d   :  { %v1151_v49 = vor.u32 1.1754944e-38, %v1150_v38  ;;  %vm1149_vm6 = vcmp.eq.f32.partialorder %v1148_v39, 8.507059e+37 }
 0x310   :  { %v1305_v53 = vpop.eup %1304 }
 0x311   :  { %v1307_v35 = vpop.eup %1306  ;;  %v1125_v18 = vmul.f32 %v1305_v53, %v1122_v34  ;;  %vm1130_vm0 = vweird.f32 %v1305_v53 }
 0x312   :  { %v1140_v48 = vmul.f32 %v1307_v35, %v1123_v52  ;;  %vm1145_vm1 = vweird.f32 %v1307_v35  ;;  %vm1798_vm3 = vmor %vm1129_vm2, %vm1130_vm0 }
 0x313   :  { %v1126_v36 = vsub.f32 1.0, %v1125_v18  ;;  %vm1146_vm5 = vmor %vm1144_vm4, %vm1145_vm1 }
 0x314   :  { %v1141_v54 = vsub.f32 1.0, %v1140_v48 }
 0x315   :  { %v1127_v37 = vmul.f32 %v1305_v53, %v1126_v36 }
 0x316   :  { %v1142_v47 = vmul.f32 %v1307_v35, %v1141_v54 }
 0x317   :  { %v1128_v42 = vadd.f32 %v1305_v53, %v1127_v37 }
 0x318   :  { %v1143_v9 = vadd.f32 %v1307_v35, %v1142_v47 }
 0x319   :  { %v1132_v43 = vsel %vm1798_vm3, %v1305_v53, %v1128_v42 }
 0x31a   :  { %v1147_v55 = vsel %vm1146_vm5, %v1307_v35, %v1143_v9  ;;  %v1137_v61 = vsel %vm1134_vm8, %v1136_v60, %v1132_v43 }
 0x31b   :  { %v1152_v10 = vsel %vm1149_vm6, %v1151_v49, %v1147_v55 }
 0x31c   :  { %v1156_v58 = vrot.slane %v1152_v10, 7 }
 0x31e   :  { %v1158_v0 = vsel %vm1157_vm7, %v1137_v61, %v1156_v58 }
 0x31f   :  { %1164 = vst.msk [vmem:[#allocation3] sm:$0x3] %vm1162_vm9, %v1158_v0 }
 0x320   :  { %1175 = dma.vmem_to_hbm [thread:$0]  %s1171_s11, 32, %s1173_s14, [#allocation4]  }
 0x321   :  { %1332 = dma.done.wait [#allocation4], 32  }
 0x322   :  { %1333 = vsyncadd [#allocation4], 4294967264 }
 0x323   :  { %1180 = vsyncpa [#allocation4], 1 }

</bundles_post_ra>
